<compile_context>
chip_gen: v5e
topology: v5e:2x2
jax: 0.10.0
libtpu: 0.0.40
codegen_flags: <defaults>
</compile_context>

<pallas_src>
import jax
import jax.numpy as jnp
from jax.experimental import pallas as pl
from jax.experimental.pallas import tpu as pltpu


def _round_up(a, b):
    return (a + b - 1) // b * b


def _nconv_matmul_kernel(x_ref, a_ref, o_ref):
    # x_ref: (tm, V)   a_ref: (V, W)   o_ref: (tm, W)
    # Minor dims are full array dims; Mosaic lane-pads the tiles in VMEM and
    # masks the K/N remainders of the matmul.
    o_ref[...] = jnp.dot(
        x_ref[...], a_ref[...], preferred_element_type=jnp.float32
    ).astype(o_ref.dtype)


def _choose_row_tile(M, V, W, itemsize, tm_req, vmem_budget):
    """Row tile: multiple of 8, fits the double-buffered VMEM budget, and (when
    there is more than one step) gives an even grid so v7x's 2 TCs split evenly."""
    Vp = _round_up(V, 128)                       # lane padding of the x tile in VMEM
    Wp = _round_up(W, 128)                       # lane padding of the out tile in VMEM
    a_bytes = 2 * _round_up(V, 8) * Wp * itemsize    # resident A (worst case: 2 bufs)
    per_row = 2 * (Vp + Wp) * itemsize               # x + out tiles, double-buffered
    avail = max(vmem_budget - a_bytes, per_row * 8)
    tm_fit = max(8, (avail // per_row) // 8 * 8)

    tm = max(8, min(_round_up(tm_req, 8), _round_up(M, 8), tm_fit))
    steps = pl.cdiv(M, tm)
    if steps > 1 and steps % 2 == 1:             # balance across 2 TensorCores (v7x)
        cand = max(8, _round_up(pl.cdiv(M, steps + 1), 8))
        if pl.cdiv(M, cand) % 2 == 0:
            tm, steps = cand, pl.cdiv(M, cand)
    vmem_needed = per_row * tm + a_bytes
    return tm, steps, vmem_needed


def nconv(x, A, *, tm=2048, compute_dtype=None, vmem_budget_bytes=24 * 1024 * 1024):
    """GraphWaveNet nconv: einsum('ncvl,vw->ncwl', x, A) -> (N, C, W, L)."""
    N, C, V, L = x.shape
    V2, W = A.shape
    assert V2 == V, f"A first dim {V2} must match node dim {V} of x"
    out_dtype = x.dtype

    if compute_dtype is not None:          # optional, numerics-affecting (e.g. bf16)
        x = x.astype(compute_dtype)
        A = A.astype(compute_dtype)

    M = N * C * L
    # Put the contracted node axis V on the lane/contraction dim of the GEMM.
    # Single XLA relayout pass; no jnp.pad / padded HBM copies (see TODO above
    # for fusing this relayout into the kernel).
    xm = jnp.transpose(x, (0, 1, 3, 2)).reshape(M, V)

    itemsize = jnp.dtype(x.dtype).itemsize
    tm_sel, steps, vmem_needed = _choose_row_tile(
        M, V, W, itemsize, tm, vmem_budget_bytes)

    # A stays resident in VMEM (constant index_map). Single-buffer it when it is
    # large so the saved buffer feeds a bigger row tile (v7x: 64 MiB VMEM).
    a_kwargs = {}
    if _round_up(V, 8) * _round_up(W, 128) * itemsize >= (2 << 20):
        a_kwargs["pipeline_mode"] = pl.Buffered(1)
    a_spec = pl.BlockSpec((V, W), lambda i: (0, 0), **a_kwargs)

    compiler_kwargs = {}
    if vmem_needed > (14 << 20):   # would exceed v5e's 16 MiB default scoped VMEM
        compiler_kwargs["vmem_limit_bytes"] = int(
            min(vmem_needed + (4 << 20), 30 << 20))

    cost = pl.CostEstimate(
        flops=2 * M * V * W,
        transcendentals=0,
        bytes_accessed=(M * V + V * W) * itemsize
        + M * W * jnp.dtype(out_dtype).itemsize,
    )

    out2d = pl.pallas_call(
        _nconv_matmul_kernel,
        out_shape=jax.ShapeDtypeStruct((M, W), out_dtype),
        grid_spec=pltpu.PrefetchScalarGridSpec(
            num_scalar_prefetch=0,
            grid=(steps,),
            in_specs=[
                pl.BlockSpec((tm_sel, V), lambda i: (i, 0)),  # x row tile
                a_spec,                                        # A resident in VMEM
            ],
            out_specs=pl.BlockSpec((tm_sel, W), lambda i: (i, 0)),
        ),
        compiler_params=pltpu.CompilerParams(
            dimension_semantics=("parallel",), **compiler_kwargs),
        cost_estimate=cost,
    )(xm, A)

    # (M, W) -> (N, C, L, W) -> (N, C, W, L).  (Wrapper-side relayout; see TODO.)
    return jnp.transpose(out2d.reshape(N, C, L, W), (0, 1, 3, 2))


def nconv_multi(x, supports, *, tm=2048, compute_dtype=None):
    """Apply nconv with several support matrices in ONE kernel launch.

    Concatenates the supports along W ([A1|A2|...]) so the dominant x HBM read
    is amortised across all of them and the MXU's 256-wide N dim is filled
    (v6e/v7x). Returns a list of (N, C, W_i, L) arrays, one per support.
    """
    widths = [a.shape[1] for a in supports]
    out = nconv(x, jnp.concatenate(supports, axis=1), tm=tm,
                compute_dtype=compute_dtype)
    outs, off = [], 0
    for w in widths:
        outs.append(out[:, :, off:off + w, :])
        off += w
    return outs


if __name__ == "__main__":
    key = jax.random.PRNGKey(0)

    # Small deterministic example consistent with GraphWaveNet's nconv.
    N, C, V, L = 2, 4, 16, 8
    W = V  # adjacency is (num_nodes, num_nodes)
    kx, ka, kx2, ka2, ka3 = jax.random.split(key, 5)
    x = jax.random.normal(kx, (N, C, V, L), dtype=jnp.float32)
    A = jax.random.normal(ka, (V, W), dtype=jnp.float32)

    out = jax.block_until_ready(nconv(x, A))
    ref = jnp.einsum("ncvl,vw->ncwl", x, A)
    assert out.shape == (N, C, W, L)
    assert jnp.allclose(out, ref, atol=1e-5, rtol=1e-5)

    # Dims not multiples of 8/128 + a forced multi-step grid: exercises Mosaic's
    # in-VMEM tile padding and the masked partial edge block (no jnp.pad anywhere).
    N2, C2, V2n, L2 = 2, 3, 20, 5
    x2 = jax.random.normal(kx2, (N2, C2, V2n, L2), dtype=jnp.float32)
    A2 = jax.random.normal(ka2, (V2n, V2n), dtype=jnp.float32)
    out2 = jax.block_until_ready(nconv(x2, A2, tm=16))
    ref2 = jnp.einsum("ncvl,vw->ncwl", x2, A2)
    assert out2.shape == (N2, C2, V2n, L2)
    assert jnp.allclose(out2, ref2, atol=1e-5, rtol=1e-5)

    # Multiple supports batched into a single launch (GraphWaveNet gcn pattern).
    A3 = jax.random.normal(ka3, (V, W), dtype=jnp.float32)
    outs = jax.block_until_ready(nconv_multi(x, [A, A3]))
    ref3 = jnp.einsum("ncvl,vw->ncwl", x, A3)
    assert jnp.allclose(outs[0], ref, atol=1e-5, rtol=1e-5)
    assert jnp.allclose(outs[1], ref3, atol=1e-5, rtol=1e-5)

    print("KERNEL_OK")
</pallas_src>

<mosaic_0001>
module attributes {stable_mosaic.version = 11 : i64} {
  func.func @_nconv_matmul_kernel(%arg0: i32, %arg1: memref<64x16xf32, #tpu.memory_space<vmem>>, %arg2: memref<16x16xf32, #tpu.memory_space<vmem>>, %arg3: memref<64x16xf32, #tpu.memory_space<vmem>>) attributes {dimension_semantics = [#tpu.dimension_semantics<parallel>], iteration_bounds = array<i64: 1>, scalar_prefetch = 0 : i64, scratch_operands = 0 : i64, tpu.core_type = #tpu.core_type<tc>, window_params = [{transform_indices = @transform_0, window_bounds = array<i64: 64, 16>}, {pipeline_mode = #tpu.pipeline_mode<synchronous>, transform_indices = @transform_1, window_bounds = array<i64: 16, 16>}, {transform_indices = @transform_2, window_bounds = array<i64: 64, 16>}]} {
    %c0 = arith.constant 0 : index
    %c0_0 = arith.constant 0 : index
    %0 = vector.load %arg1[%c0, %c0_0] : memref<64x16xf32, #tpu.memory_space<vmem>>, vector<64x16xf32>
    %c0_1 = arith.constant 0 : index
    %c0_2 = arith.constant 0 : index
    %1 = vector.load %arg2[%c0_1, %c0_2] : memref<16x16xf32, #tpu.memory_space<vmem>>, vector<16x16xf32>
    %cst = arith.constant dense<0.000000e+00> : vector<64x16xf32>
    %2 = tpu.matmul %0, %1, %cst {dimension_numbers = #tpu.dot_dimension_numbers<[1], [0], [0], [1], [0, 0, 1, 1], [], []>} : vector<64x16xf32>, vector<16x16xf32>, vector<64x16xf32> -> vector<64x16xf32>
    %c0_3 = arith.constant 0 : index
    %c0_4 = arith.constant 0 : index
    %3 = vector.load %arg3[%c0_3, %c0_4] : memref<64x16xf32, #tpu.memory_space<vmem>>, vector<64x16xf32>
    tpu.vector_store %arg3[%c0_3, %c0_4], %2 {strides = array<i32>} : memref<64x16xf32, #tpu.memory_space<vmem>>, vector<64x16xf32>,
    return
  }
  func.func @transform_0(%arg0: i32) -> (i32, i32) {
    %c0_i32 = arith.constant 0 : i32
    %c0_i32_0 = arith.constant 0 : i32
    return %arg0, %c0_i32 : i32, i32
  }
  func.func @transform_1(%arg0: i32) -> (i32, i32) {
    %c0_i32 = arith.constant 0 : i32
    %c0_i32_0 = arith.constant 0 : i32
    %c0_i32_1 = arith.constant 0 : i32
    return %c0_i32, %c0_i32_0 : i32, i32
  }
  func.func @transform_2(%arg0: i32) -> (i32, i32) {
    %c0_i32 = arith.constant 0 : i32
    %c0_i32_0 = arith.constant 0 : i32
    return %arg0, %c0_i32 : i32, i32
  }
}

</mosaic_0001>

<bundles_post_ra>
// kernel: tpu_custom_call.1
= control target key start
LH: loop header
LB: loop body
LE: loop exit
PB: predicated region body
PF: predicated region fallthrough
CT: control target
= control target key end

     0   :  { %vm21_vm0 = vcmask 130048   ;;  %s198_s1 = inlined_call_operand.vmem [shape: f32[16,16], index: 1, kind: input, shape index: {}]   ;;  %s199_s0 = inlined_call_operand.vmem [shape: f32[64,16], index: 0, kind: input, shape index: {}]   ;;  %s200_s2 = inlined_call_operand.vmem [shape: f32[64,16], index: 2, kind: output, shape index: {}]  }
   0x1   :  { %v20_v0 = vld [vmem:[%s198_s1 + $0x8] sm:$0xff]  ;;  %v19_v1 = vld [vmem:[%s198_s1] sm:$0xff]  ;;  %v17_v3 = vld [vmem:[%s199_s0 + $0x30] sm:$0xff] }
   0x2   :  { %108 = vmatpush.msra.mxu2 %v20_v0  ;;  %109 = vmatpush.msra.mxu3 %v20_v0  ;;  %v15_v2 = vld [vmem:[%s199_s0 + $0x20] sm:$0xff]  ;;  %v13_v5 = vld [vmem:[%s199_s0 + $0x10] sm:$0xff]  ;;  %v16_v6 = vld [vmem:[%s199_s0 + $0x28] sm:$0xff] }
   0x3   :  { %60 = vmatpush.msra.mxu0 %v20_v0  ;;  %107 = vmatpush.msra.mxu1 %v20_v0  ;;  %v11_v4 = vld [vmem:[%s199_s0] sm:$0xff]  ;;  %v18_v7 = vld [vmem:[%s199_s0 + $0x38] sm:$0xff]  ;;  %v12_v8 = vld [vmem:[%s199_s0 + $0x8] sm:$0xff] }
   0x4   :  { %111 = vmatpush.msra.mxu2 %v19_v1  ;;  %112 = vmatpush.msra.mxu3 %v19_v1  ;;  %v14_v9 = vld [vmem:[%s199_s0 + $0x18] sm:$0xff] }
   0x5   :  { %103 = vmatmul.msk.f32.vlgmr.msra.gmra.mxu2 %vm21_vm0, %v15_v2  ;;  %105 = vmatmul.msk.f32.vlgmr.msra.gmra.mxu3 %vm21_vm0, %v17_v3 }
   0x6   :  { %61 = vmatpush.msra.mxu0 %v19_v1  ;;  %110 = vmatpush.msra.mxu1 %v19_v1 }
   0x7   :  { %99 = vmatmul.msk.f32.vlgmr.msra.gmra.mxu0 %vm21_vm0, %v11_v4  ;;  %101 = vmatmul.msk.f32.vlgmr.msra.gmra.mxu1 %vm21_vm0, %v13_v5 }
   0xd   :  { %104 = vmatmul.msk.f32.gmra.mxu2 %vm21_vm0, %v16_v6  ;;  %106 = vmatmul.msk.f32.gmra.mxu3 %vm21_vm0, %v18_v7 }
   0xf   :  { %100 = vmatmul.msk.f32.gmra.mxu0 %vm21_vm0, %v12_v8  ;;  %102 = vmatmul.msk.f32.gmra.mxu1 %vm21_vm0, %v14_v9 }
  0x84   :  { %v63_v10 = vpop.f32.mrf.mxu0  ;;  %v69_v11 = vpop.f32.mrf.mxu1 }
  0x85   :  { %87 = vst.msk [vmem:[%s200_s2] sm:$0xff] %vm21_vm0, %v63_v10 }
  0x86   :  { %89 = vst.msk [vmem:[%s200_s2 + $0x10] sm:$0xff] %vm21_vm0, %v69_v11 }
  0x88   :  { %v75_v12 = vpop.f32.mrf.mxu2  ;;  %v81_v13 = vpop.f32.mrf.mxu3 }
  0x89   :  { %91 = vst.msk [vmem:[%s200_s2 + $0x20] sm:$0xff] %vm21_vm0, %v75_v12 }
  0x8a   :  { %93 = vst.msk [vmem:[%s200_s2 + $0x30] sm:$0xff] %vm21_vm0, %v81_v13 }
  0x8c   :  { %v66_v14 = vpop.f32.mrf.mxu0  ;;  %v72_v15 = vpop.f32.mrf.mxu1 }
  0x8d   :  { %88 = vst.msk [vmem:[%s200_s2 + $0x8] sm:$0xff] %vm21_vm0, %v66_v14 }
  0x8e   :  { %90 = vst.msk [vmem:[%s200_s2 + $0x18] sm:$0xff] %vm21_vm0, %v72_v15 }
  0x90   :  { %v78_v16 = vpop.f32.mrf.mxu2  ;;  %v84_v17 = vpop.f32.mrf.mxu3 }
  0x91   :  { %92 = vst.msk [vmem:[%s200_s2 + $0x28] sm:$0xff] %vm21_vm0, %v78_v16 }
  0x92   :  { %94 = vst.msk [vmem:[%s200_s2 + $0x38] sm:$0xff] %vm21_vm0, %v84_v17 }

</bundles_post_ra>
